<compile_context>
chip_gen: v7x
topology: tpu7x:2x2x1
jax: 0.10.0
libtpu: 0.0.40
codegen_flags: <defaults>
</compile_context>

<pallas_src>
import functools

import jax
import jax.numpy as jnp
from jax import lax
from jax.experimental import pallas as pl
from jax.experimental.pallas import tpu as pltpu

N_THETA = 24
N_R = 15
LANE_PAD = 128  # lane-dense fused output width


def _round_up(v, m):
    return ((v + m - 1) // m) * m


def _goal_kernel(x_ref, w_ref, b_ref, o_ref, *, n_theta, n_r):
    # f32 x is cast to bf16 on the VPU just before the MXU (free, hidden under
    # the input DMA); accumulation and all softmax math stay f32.
    logits = jnp.dot(x_ref[...].astype(jnp.bfloat16), w_ref[...],
                     preferred_element_type=jnp.float32) + b_ref[...]

    p = logits.shape[-1]
    # Single-vreg (1, P) lane masks; rely on broadcasting in the selects.
    lane = lax.broadcasted_iota(jnp.int32, (1, p), 1)
    mask_theta = lane < n_theta
    mask_r = jnp.logical_and(lane >= n_theta, lane < n_theta + n_r)
    mask_any = jnp.logical_or(mask_theta, mask_r)

    # Fused dual-head log-softmax: two masked row maxes (XLU), ONE exp pass
    # over the tile (EUP), two masked row sums, one final select.
    # exp(-inf) = 0 keeps padded lanes out of both sums without NaNs.
    neg_inf = jnp.float32(-jnp.inf)
    mx_t = jnp.max(jnp.where(mask_theta, logits, neg_inf), axis=-1, keepdims=True)
    mx_r = jnp.max(jnp.where(mask_r, logits, neg_inf), axis=-1, keepdims=True)
    mx_sel = jnp.where(mask_theta, mx_t, mx_r)                    # (TB, P)
    ex = jnp.exp(jnp.where(mask_any, logits - mx_sel, neg_inf))   # one EUP pass
    sum_t = jnp.sum(jnp.where(mask_theta, ex, 0.0), axis=-1, keepdims=True)
    sum_r = jnp.sum(jnp.where(mask_r, ex, 0.0), axis=-1, keepdims=True)
    lse_sel = jnp.where(mask_theta, jnp.log(sum_t), jnp.log(sum_r))
    # Padded lanes (>= n_theta + n_r) carry r-head garbage; they are sliced
    # off in the wrapper, so no extra select is spent zeroing them.
    o_ref[...] = logits - mx_sel - lse_sel


def goal_prediction_packed(x, w_theta, b_theta, w_r, b_r, *, batch_tile=2048):
    """Returns the packed (B, 128) f32 slab: lanes [0,24)=theta, [24,39)=r."""
    B, E = x.shape
    NT = w_theta.shape[-1]
    NR = w_r.shape[-1]
    P = LANE_PAD
    assert NT + NR <= P

    # --- Fuse + lane-pad parameters (tiny, one-time layout plumbing). ---
    w_fused = (jnp.zeros((E, P), jnp.float32)
               .at[:, :NT].set(w_theta.astype(jnp.float32))
               .at[:, NT:NT + NR].set(w_r.astype(jnp.float32))
               ).astype(jnp.bfloat16)
    b_fused = (jnp.zeros((1, P), jnp.float32)
               .at[:, :NT].set(b_theta.reshape(1, -1).astype(jnp.float32))
               .at[:, NT:NT + NR].set(b_r.reshape(1, -1).astype(jnp.float32)))

    # --- Batch tiling: large tiles (per-step overhead ~0.35 us), multiple of 8
    # sublanes, but >=2 grid steps once B >= 16 so dimension_semantics
    # ("parallel",) can shard the batch across v7x's two TensorCores.
    # No jnp.pad: Pallas masks the ragged trailing block on writeback. ---
    if B <= 8:
        tb = B                                 # single block == full batch dim
    else:
        tb = min(batch_tile, _round_up(B, 8))
        if B >= 16:
            tb = min(tb, _round_up(pl.cdiv(B, 2), 8))
        tb = max(8, _round_up(tb, 8))
    grid = (pl.cdiv(B, tb),)

    # --- VMEM budget: double-buffered x/out tiles + resident weights/bias,
    # clamped to 32 MiB (safe even on v7x's 64 MiB physical VMEM). ---
    vmem_need = (2 * tb * E * 4        # x tiles (f32, double-buffered)
                 + 2 * tb * P * 4      # out tiles (f32, double-buffered)
                 + 2 * E * P * 2       # fused weights (bf16)
                 + 8 * P * 4)          # bias (padded sublane tile)
    vmem_limit = int(min(max(2 * vmem_need, 4 << 20), 32 << 20))

    cost = pl.CostEstimate(
        flops=2 * B * E * P,
        transcendentals=B * P,
        bytes_accessed=B * E * 4 + E * P * 2 + P * 4 + B * P * 4)

    kernel = functools.partial(_goal_kernel, n_theta=NT, n_r=NR)
    return pl.pallas_call(
        kernel,
        grid=grid,
        in_specs=[
            pl.BlockSpec((tb, E), lambda i: (i, 0)),   # x: tiled over batch
            pl.BlockSpec((E, P), lambda i: (0, 0)),    # fused W: VMEM-resident
            pl.BlockSpec((1, P), lambda i: (0, 0)),    # fused bias
        ],
        out_specs=pl.BlockSpec((tb, P), lambda i: (i, 0)),
        out_shape=jax.ShapeDtypeStruct((B, P), jnp.float32),
        compiler_params=pltpu.CompilerParams(
            dimension_semantics=("parallel",),
            vmem_limit_bytes=vmem_limit),
        cost_estimate=cost,
    )(x.astype(jnp.float32), w_fused, b_fused)


def goal_prediction(x, w_theta, b_theta, w_r, b_r, *, batch_tile=2048):
    """x: (B, E); w_theta: (E, 24); b_theta: (1, 24); w_r: (E, 15); b_r: (1, 15).

    Returns (log_softmax_theta (B, 24), log_softmax_r (B, 15)), both f32.
    Under jit, performance-sensitive consumers should prefer
    goal_prediction_packed() and index the packed slab directly.
    """
    NT = w_theta.shape[-1]
    NR = w_r.shape[-1]
    out = goal_prediction_packed(x, w_theta, b_theta, w_r, b_r,
                                 batch_tile=batch_tile)
    packed = out[:, :NT + NR]      # single trim; splits fuse under jit
    return packed[:, :NT], packed[:, NT:NT + NR]


def init_params(key, total_emb_size):
    """Deterministic synthetic init matching nn.Linear(total_emb_size, 24/15)."""
    k1, k2, k3, k4 = jax.random.split(key, 4)
    bound = 1.0 / jnp.sqrt(total_emb_size)
    # Stored as (in, out) so the kernel can do x @ W directly.
    w_theta = jax.random.uniform(k1, (total_emb_size, N_THETA), jnp.float32, -bound, bound)
    b_theta = jax.random.uniform(k2, (1, N_THETA), jnp.float32, -bound, bound)
    w_r = jax.random.uniform(k3, (total_emb_size, N_R), jnp.float32, -bound, bound)
    b_r = jax.random.uniform(k4, (1, N_R), jnp.float32, -bound, bound)
    return w_theta, b_theta, w_r, b_r


def reference(x, w_theta, b_theta, w_r, b_r):
    """Reference with the same bf16 operand cast as the kernel (f32 accumulate)."""
    xb = x.astype(jnp.bfloat16)
    lt = jnp.dot(xb, w_theta.astype(jnp.bfloat16),
                 preferred_element_type=jnp.float32) + b_theta
    lr = jnp.dot(xb, w_r.astype(jnp.bfloat16),
                 preferred_element_type=jnp.float32) + b_r
    return jax.nn.log_softmax(lt, axis=-1), jax.nn.log_softmax(lr, axis=-1)


if __name__ == "__main__":
    key = jax.random.PRNGKey(0)
    kx, kp, kx2 = jax.random.split(key, 3)

    batch = 8
    total_emb_size = 32
    x = jax.random.normal(kx, (batch, total_emb_size), jnp.float32)
    w_theta, b_theta, w_r, b_r = init_params(kp, total_emb_size)

    # Single-tile path.
    theta_out, r_out = goal_prediction(x, w_theta, b_theta, w_r, b_r)
    jax.block_until_ready((theta_out, r_out))
    theta_ref, r_ref = reference(x, w_theta, b_theta, w_r, b_r)
    assert theta_out.shape == (batch, N_THETA) and r_out.shape == (batch, N_R)
    assert jnp.allclose(theta_out, theta_ref, atol=1e-4, rtol=1e-4)
    assert jnp.allclose(r_out, r_ref, atol=1e-4, rtol=1e-4)

    # Multi-step grid + ragged trailing block (B=20, tb=16 -> 2 grid steps,
    # last block masked by Pallas; no wrapper-side pad).
    batch2 = 20
    x2 = jax.random.normal(kx2, (batch2, total_emb_size), jnp.float32)
    theta2, r2 = goal_prediction(x2, w_theta, b_theta, w_r, b_r)
    jax.block_until_ready((theta2, r2))
    theta2_ref, r2_ref = reference(x2, w_theta, b_theta, w_r, b_r)
    assert theta2.shape == (batch2, N_THETA) and r2.shape == (batch2, N_R)
    assert jnp.allclose(theta2, theta2_ref, atol=1e-4, rtol=1e-4)
    assert jnp.allclose(r2, r2_ref, atol=1e-4, rtol=1e-4)

    print("KERNEL_OK")
</pallas_src>

<mosaic_0001>
module attributes {stable_mosaic.version = 11 : i64} {
  func.func @_goal_kernel(%arg0: i32, %arg1: memref<8x32xf32, #tpu.memory_space<vmem>>, %arg2: memref<32x128xbf16, #tpu.memory_space<vmem>>, %arg3: memref<1x128xf32, #tpu.memory_space<vmem>>, %arg4: memref<8x128xf32, #tpu.memory_space<vmem>>) attributes {dimension_semantics = [#tpu.dimension_semantics<parallel>], iteration_bounds = array<i64: 1>, scalar_prefetch = 0 : i64, scratch_operands = 0 : i64, tpu.core_type = #tpu.core_type<tc>, window_params = [{transform_indices = @transform_0, window_bounds = array<i64: 8, 32>}, {pipeline_mode = #tpu.pipeline_mode<synchronous>, transform_indices = @transform_1, window_bounds = array<i64: 32, 128>}, {pipeline_mode = #tpu.pipeline_mode<synchronous>, transform_indices = @transform_2, window_bounds = array<i64: 1, 128>}, {transform_indices = @transform_3, window_bounds = array<i64: 8, 128>}]} {
    %c0 = arith.constant 0 : index
    %c0_0 = arith.constant 0 : index
    %0 = vector.load %arg1[%c0, %c0_0] : memref<8x32xf32, #tpu.memory_space<vmem>>, vector<8x32xf32>
    %1 = arith.truncf %0 : vector<8x32xf32> to vector<8x32xbf16>
    %c0_1 = arith.constant 0 : index
    %c0_2 = arith.constant 0 : index
    %2 = vector.load %arg2[%c0_1, %c0_2] : memref<32x128xbf16, #tpu.memory_space<vmem>>, vector<32x128xbf16>
    %cst = arith.constant dense<0.000000e+00> : vector<8x128xf32>
    %3 = tpu.matmul %1, %2, %cst {dimension_numbers = #tpu.dot_dimension_numbers<[1], [0], [0], [1], [0, 0, 1, 1], [], []>} : vector<8x32xbf16>, vector<32x128xbf16>, vector<8x128xf32> -> vector<8x128xf32>
    %c0_3 = arith.constant 0 : index
    %c0_4 = arith.constant 0 : index
    %4 = vector.load %arg3[%c0_3, %c0_4] : memref<1x128xf32, #tpu.memory_space<vmem>>, vector<1x128xf32>
    %5 = vector.broadcast %4 : vector<1x128xf32> to vector<8x128xf32>
    %6 = arith.addf %3, %5 : vector<8x128xf32>
    %7 = tpu.iota {dimensions = array<i32: 1>} : vector<1x128xi32>
    %c24_i32 = arith.constant 24 : i32
    %8 = vector.broadcast %c24_i32 : i32 to vector<1x128xi32>
    %9 = arith.cmpi slt, %7, %8 : vector<1x128xi32>
    %c24_i32_5 = arith.constant 24 : i32
    %10 = vector.broadcast %c24_i32_5 : i32 to vector<1x128xi32>
    %11 = arith.cmpi sge, %7, %10 : vector<1x128xi32>
    %c39_i32 = arith.constant 39 : i32
    %12 = vector.broadcast %c39_i32 : i32 to vector<1x128xi32>
    %13 = arith.cmpi slt, %7, %12 : vector<1x128xi32>
    %14 = arith.andi %11, %13 : vector<1x128xi1>
    %15 = arith.ori %9, %14 : vector<1x128xi1>
    %cst_6 = arith.constant 0xFF800000 : f32
    %16 = vector.shape_cast %9 : vector<1x128xi1> to vector<1x128xi1>
    %17 = vector.broadcast %16 : vector<1x128xi1> to vector<8x128xi1>
    %18 = vector.broadcast %cst_6 : f32 to vector<8x128xf32>
    %19 = arith.select %17, %6, %18 : vector<8x128xi1>, vector<8x128xf32>
    %cst_7 = arith.constant dense<0xFF800000> : vector<8xf32>
    %20 = vector.multi_reduction <maximumf>, %19, %cst_7 [1] : vector<8x128xf32> to vector<8xf32>
    %21 = vector.shape_cast %20 : vector<8xf32> to vector<8x1xf32>
    %cst_8 = arith.constant 0xFF800000 : f32
    %22 = vector.shape_cast %14 : vector<1x128xi1> to vector<1x128xi1>
    %23 = vector.broadcast %22 : vector<1x128xi1> to vector<8x128xi1>
    %24 = vector.broadcast %cst_8 : f32 to vector<8x128xf32>
    %25 = arith.select %23, %6, %24 : vector<8x128xi1>, vector<8x128xf32>
    %cst_9 = arith.constant dense<0xFF800000> : vector<8xf32>
    %26 = vector.multi_reduction <maximumf>, %25, %cst_9 [1] : vector<8x128xf32> to vector<8xf32>
    %27 = vector.shape_cast %26 : vector<8xf32> to vector<8x1xf32>
    %28 = vector.shape_cast %9 : vector<1x128xi1> to vector<1x128xi1>
    %29 = vector.broadcast %28 : vector<1x128xi1> to vector<8x128xi1>
    %30 = vector.shape_cast %21 : vector<8x1xf32> to vector<8x1xf32>
    %31 = vector.broadcast %30 : vector<8x1xf32> to vector<8x128xf32>
    %32 = vector.shape_cast %27 : vector<8x1xf32> to vector<8x1xf32>
    %33 = vector.broadcast %32 : vector<8x1xf32> to vector<8x128xf32>
    %34 = arith.select %29, %31, %33 : vector<8x128xi1>, vector<8x128xf32>
    %35 = arith.subf %6, %34 : vector<8x128xf32>
    %cst_10 = arith.constant 0xFF800000 : f32
    %36 = vector.shape_cast %15 : vector<1x128xi1> to vector<1x128xi1>
    %37 = vector.broadcast %36 : vector<1x128xi1> to vector<8x128xi1>
    %38 = vector.broadcast %cst_10 : f32 to vector<8x128xf32>
    %39 = arith.select %37, %35, %38 : vector<8x128xi1>, vector<8x128xf32>
    %40 = math.exp %39 : vector<8x128xf32>
    %cst_11 = arith.constant 0.000000e+00 : f32
    %41 = vector.shape_cast %9 : vector<1x128xi1> to vector<1x128xi1>
    %42 = vector.broadcast %41 : vector<1x128xi1> to vector<8x128xi1>
    %43 = vector.broadcast %cst_11 : f32 to vector<8x128xf32>
    %44 = arith.select %42, %40, %43 : vector<8x128xi1>, vector<8x128xf32>
    %cst_12 = arith.constant dense<0.000000e+00> : vector<8xf32>
    %45 = vector.multi_reduction <add>, %44, %cst_12 [1] : vector<8x128xf32> to vector<8xf32>
    %46 = vector.shape_cast %45 : vector<8xf32> to vector<8x1xf32>
    %cst_13 = arith.constant 0.000000e+00 : f32
    %47 = vector.shape_cast %14 : vector<1x128xi1> to vector<1x128xi1>
    %48 = vector.broadcast %47 : vector<1x128xi1> to vector<8x128xi1>
    %49 = vector.broadcast %cst_13 : f32 to vector<8x128xf32>
    %50 = arith.select %48, %40, %49 : vector<8x128xi1>, vector<8x128xf32>
    %cst_14 = arith.constant dense<0.000000e+00> : vector<8xf32>
    %51 = vector.multi_reduction <add>, %50, %cst_14 [1] : vector<8x128xf32> to vector<8xf32>
    %52 = vector.shape_cast %51 : vector<8xf32> to vector<8x1xf32>
    %53 = math.log %46 : vector<8x1xf32>
    %54 = math.log %52 : vector<8x1xf32>
    %55 = vector.shape_cast %9 : vector<1x128xi1> to vector<1x128xi1>
    %56 = vector.broadcast %55 : vector<1x128xi1> to vector<8x128xi1>
    %57 = vector.shape_cast %53 : vector<8x1xf32> to vector<8x1xf32>
    %58 = vector.broadcast %57 : vector<8x1xf32> to vector<8x128xf32>
    %59 = vector.shape_cast %54 : vector<8x1xf32> to vector<8x1xf32>
    %60 = vector.broadcast %59 : vector<8x1xf32> to vector<8x128xf32>
    %61 = arith.select %56, %58, %60 : vector<8x128xi1>, vector<8x128xf32>
    %62 = arith.subf %6, %34 : vector<8x128xf32>
    %63 = arith.subf %62, %61 : vector<8x128xf32>
    %c0_15 = arith.constant 0 : index
    %c0_16 = arith.constant 0 : index
    %64 = vector.load %arg4[%c0_15, %c0_16] : memref<8x128xf32, #tpu.memory_space<vmem>>, vector<8x128xf32>
    tpu.vector_store %arg4[%c0_15, %c0_16], %63 {strides = array<i32>} : memref<8x128xf32, #tpu.memory_space<vmem>>, vector<8x128xf32>,
    return
  }
  func.func @transform_0(%arg0: i32) -> (i32, i32) {
    %c0_i32 = arith.constant 0 : i32
    %c0_i32_0 = arith.constant 0 : i32
    return %arg0, %c0_i32 : i32, i32
  }
  func.func @transform_1(%arg0: i32) -> (i32, i32) {
    %c0_i32 = arith.constant 0 : i32
    %c0_i32_0 = arith.constant 0 : i32
    %c0_i32_1 = arith.constant 0 : i32
    return %c0_i32, %c0_i32_0 : i32, i32
  }
  func.func @transform_2(%arg0: i32) -> (i32, i32) {
    %c0_i32 = arith.constant 0 : i32
    %c0_i32_0 = arith.constant 0 : i32
    %c0_i32_1 = arith.constant 0 : i32
    return %c0_i32, %c0_i32_0 : i32, i32
  }
  func.func @transform_3(%arg0: i32) -> (i32, i32) {
    %c0_i32 = arith.constant 0 : i32
    %c0_i32_0 = arith.constant 0 : i32
    return %arg0, %c0_i32 : i32, i32
  }
}

</mosaic_0001>

<bundles_post_ra>
// kernel: tpu_custom_call.1
= control target key start
LH: loop header
LB: loop body
LE: loop exit
PB: predicated region body
PF: predicated region fallthrough
CT: control target
= control target key end

     0   :  { %8 = vsyncpa [#allocation3], 0  ;;  %s344_s0 = inlined_call_operand.hbm [shape: f32[8,32], index: 0, kind: input, shape index: {}]   ;;  %s345_s1 = inlined_call_operand.hbm [shape: bf16[32,128], index: 1, kind: input, shape index: {}]   ;;  %s346_s2 = inlined_call_operand.vmem [shape: f32[1,128], index: 2, kind: input, shape index: {}]   ;;  %s347_s3 = inlined_call_operand.hbm [shape: f32[8,128], index: 3, kind: output, shape index: {}]  }
   0x1   :  { %9 = vsyncpa [#allocation6], 0 }
   0x2   :  { %10 = vsyncpa [#allocation4], 0  ;;  %s266_s12 = smov [#allocation2]   ;;  %s267_s14 = smov [#allocation5]  }
   0x3   :  { %s17_s13 = sshll.u32 %s266_s12, 4  ;;  %s26_s15 = sshll.u32 %s267_s14, 4  ;;  %s18_s13 = int_to_ptr.vmem [resolvable:$true] %s17_s13  ;;  %s293_s15 = int_to_ptr.vmem [resolvable:$true] %s26_s15 }
   0x4   :  { %s194_s18 = scalar_lea.hbm %s344_s0, 128 }
   0x5   :  { %p195_p0 = scmp.ne.s32.totalorder %s344_s0, %s194_s18  ;;  %p198_p1 = scmp.lt.u32.totalorder %s194_s18, %s344_s0 }
   0x7   :  { %p200_p2 = pnand %p198_p1, %p195_p0 }
   0x9   :  { %203 = shalt.err (!%p200_p2)
}
   0xa   :  { %s204_s23 = scalar_lea.vmem %s18_s13, 128  ;;  %p209_p4 = scmp.lt.s32.totalorder %s18_s13, %s18_s13 }
   0xb   :  { %p205_p3 = scmp.ne.s32.totalorder %s18_s13, %s204_s23  ;;  %p210_p5 = scmp.lt.s32.totalorder %s204_s23, %s204_s23 }
   0xd   :  { %p211_p6 = por %p210_p5, %p209_p4 }
   0xf   :  { %p212_p7 = pnand %p211_p6, %p205_p3 }
  0x11   :  { %215 = shalt.err (!%p212_p7)
}
  0x12   :  { %20 = dma.hbm_to_vmem [thread:$0]  %s344_s0, 128, %s18_s13, [#allocation3]  }
  0x13   :  { %s216_s28 = scalar_lea.hbm %s345_s1, 256 }
  0x14   :  { %p217_p8 = scmp.ne.s32.totalorder %s345_s1, %s216_s28  ;;  %p220_p9 = scmp.lt.u32.totalorder %s216_s28, %s345_s1 }
  0x16   :  { %p222_p10 = pnand %p220_p9, %p217_p8 }
  0x18   :  { %225 = shalt.err (!%p222_p10)
}
  0x19   :  { %s226_s6 = scalar_lea.vmem %s293_s15, 256  ;;  %p231_p12 = scmp.lt.s32.totalorder %s293_s15, %s293_s15 }
  0x1a   :  { %p227_p11 = scmp.ne.s32.totalorder %s293_s15, %s226_s6  ;;  %p232_p13 = scmp.lt.s32.totalorder %s226_s6, %s226_s6 }
  0x1c   :  { %p233_p0 = por %p232_p13, %p231_p12 }
  0x1e   :  { %p234_p1 = pnand %p233_p0, %p227_p11 }
  0x20   :  { %237 = shalt.err (!%p234_p1)
}
  0x21   :  { %s268_s0 = smov 64   ;;  %s269_s7 = smov 4  }
  0x22   :  { %32 = dma.hbm_to_vmem [thread:$0]  %s345_s1, 256, %s293_s15, [#allocation6], %s268_s0, %s268_s0, %s269_s7  }
  0x23   :  { %260 = dma.done.wait [#allocation3], 128  }
  0x24   :  { %261 = vsyncadd [#allocation3], 4294967168 }
  0x25   :  { %262 = dma.done.wait [#allocation6], 256  }
  0x26   :  { %263 = vsyncadd [#allocation6], 4294967040  ;;  %v270_v0 = vmov 0.0   ;;  %vm271_vm0 = vmmov 0   ;;  %v186_v1 = vld [vmem:[#allocation5] sm:$0xff]   ;;  %v187_v2 = vld [vmem:[#allocation5 + $0x8] sm:$0xff]   ;;  %v111_v5 = vlaneseq }
  0x27   :  { %171 = vmatprep.subr.bf16.mxu0 %v270_v0  ;;  %175 = vmatprep.mubr.msk.bf16.mxu0 %vm271_vm0, %v270_v0  ;;  %v42_v3 = vld [vmem:[#allocation2] sm:$0xff]  ;;  %vm67_vm1 = vcmask 261120  }
  0x28   :  { %172 = vmatpush3.bf16.msra.mxu0 %v186_v1  ;;  %v43_v4 = vpack.c.bf16 %v42_v3, %v42_v3  ;;  %v112_v6 = vand.u32 127, %v111_v5  ;;  %v164_v7 = vld [vmem:[%s346_s2] ss:$0 sm:$0xff]  ;;  %s272_s2 = smov [#allocation7]  }
  0x29   :  { %173 = vmatprep.subr.bf16.mxu0 %v270_v0  ;;  %s154_s11 = sshll.u32 %s272_s2, 4  ;;  %s155_s11 = int_to_ptr.vmem [resolvable:$true] %s154_s11 }
  0x2a   :  { %vm113_vm2 = vcmp.lt.s32.totalorder %v112_v6, 24  ;;  %vm114_vm3 = vcmp.ge.s32.totalorder %v112_v6, 24  ;;  %vm115_vm4 = vcmp.lt.s32.totalorder %v112_v6, 39  ;;  %s238_s12 = scalar_lea.vmem %s155_s11, 128  ;;  %p243_p3 = scmp.lt.s32.totalorder %s155_s11, %s155_s11 }
  0x2b   :  { %vm116_vm5 = vmand %vm114_vm3, %vm115_vm4  ;;  %p239_p2 = scmp.ne.s32.totalorder %s155_s11, %s238_s12  ;;  %p244_p4 = scmp.lt.s32.totalorder %s238_s12, %s238_s12 }
  0x2c   :  { %174 = vmatpush3.bf16.msra.mxu0 %v187_v2  ;;  %vm117_vm6 = vmor %vm113_vm2, %vm116_vm5 }
  0x2d   :  { %p245_p5 = por %p244_p4, %p243_p3 }
  0x2f   :  { %176 = vmatmul.mubr.msk.bf16.vlgmr.msra.gmra.mrb[0].mxu0 %vm67_vm1, %v43_v4  ;;  %p246_p6 = pnand %p245_p5, %p239_p2 }
 0x102   :  { %v105_v8 = vpop.f32.mrb[0].mxu0 }
 0x103   :  { %v106_v9 = vadd.f32 %v164_v7, %v105_v8  ;;  %v177_v10 = vpop.f32.mrb[1].mxu0 }
 0x104   :  { %v108_v11 = vpop.f32.mrb[2].mxu0 }
 0x105   :  { %v178_v12 = vpop.f32.mrb[3].mxu0  ;;  %v120_v13 = vsel %vm113_vm2, %v106_v9, -inf  ;;  %v125_v14 = vsel %vm116_vm5, %v106_v9, -inf }
 0x106   :  { %121 = vmax.xlane.f32.xlu0 %v120_v13 }
 0x10a   :  { %126 = vmax.xlane.f32.xlu0 %v125_v14 }
 0x193   :  { %v122_v15 = vpop.xlane.xlu0 %121 }
 0x197   :  { %v127_v16 = vpop.xlane.xlu0 %126 }
 0x198   :  { %v128_v17 = vsel %vm113_vm2, %v122_v15, %v127_v16 }
 0x199   :  { %v129_v18 = vsub.f32 %v106_v9, %v128_v17 }
 0x19b   :  { %v132_v19 = vsel %vm117_vm6, %v129_v18, -inf }
 0x19c   :  { %v133_v20 = vmul.f32 1.442695, %v132_v19 }
 0x19e   :  { %188 = vpow2.f32 %v133_v20 }
 0x1a8   :  { %v189_v21 = vpop.eup %188 }
 0x1a9   :  { %v135_v22 = vsel %vm113_vm2, %v189_v21, 0.0  ;;  %v138_v23 = vsel %vm116_vm5, %v189_v21, 0.0 }
 0x1aa   :  { %136 = vadd.xlane.f32.xlu1 %v135_v22 }
 0x1ae   :  { %139 = vadd.xlane.f32.xlu1 %v138_v23 }
 0x237   :  { %v137_v24 = vpop.xlane.xlu1 %136 }
 0x238   :  { %190 = vlog2.f32 %v137_v24 }
 0x23b   :  { %v140_v25 = vpop.xlane.xlu1 %139 }
 0x23c   :  { %192 = vlog2.f32 %v140_v25 }
 0x242   :  { %v191_v26 = vpop.eup %190 }
 0x243   :  { %v142_v28 = vmul.f32 0.6931472, %v191_v26 }
 0x246   :  { %v193_v27 = vpop.eup %192 }
 0x247   :  { %v144_v29 = vmul.f32 0.6931472, %v193_v27 }
 0x249   :  { %v145_v30 = vsel %vm113_vm2, %v142_v28, %v144_v29 }
 0x24a   :  { %v146_v31 = vsub.f32 %v129_v18, %v145_v30 }
 0x24c   :  { %147 = vst [vmem:[#allocation7] sm:$0xff] %v146_v31 }
 0x24d   :  { %249 = shalt.err (!%p246_p6)
}
 0x24e   :  { %s250_s15 = scalar_lea.hbm %s347_s3, 128 }
 0x24f   :  { %p251_p7 = scmp.ne.s32.totalorder %s347_s3, %s250_s15  ;;  %p254_p8 = scmp.lt.u32.totalorder %s250_s15, %s347_s3 }
 0x251   :  { %p256_p9 = pnand %p254_p8, %p251_p7 }
 0x253   :  { %259 = shalt.err (!%p256_p9)
}
 0x254   :  { %157 = dma.vmem_to_hbm [thread:$0]  %s155_s11, 128, %s347_s3, [#allocation4]  }
 0x255   :  { %264 = dma.done.wait [#allocation4], 128  }
 0x256   :  { %265 = vsyncadd [#allocation4], 4294967168 }
 0x257   :  { %161 = vsyncpa [#allocation3], 1 }
 0x258   :  { %162 = vsyncpa [#allocation6], 1 }
 0x259   :  { %163 = vsyncpa [#allocation4], 1 }

</bundles_post_ra>
